<compile_context>
chip_gen: v7x
topology: tpu7x:2x2x1
jax: 0.10.0
libtpu: 0.0.40
codegen_flags: <defaults>
</compile_context>

<pallas_src>
import functools
import math

import jax
import jax.numpy as jnp
from jax.experimental import pallas as pl
from jax.experimental.pallas import tpu as pltpu


# ----------------------------- Pallas kernel ------------------------------ #

def _layer_norm(x, gamma, beta, eps=1e-12):
    # gamma/beta are (1, D); x is (S, D); all math in f32.
    mean = jnp.mean(x, axis=-1, keepdims=True)
    var = jnp.mean((x - mean) ** 2, axis=-1, keepdims=True)
    return gamma * ((x - mean) * jax.lax.rsqrt(var + eps)) + beta


def encoder_kernel(n_head,
                   x_ref,
                   wqkv_ref, bqkv_ref, wo_ref, bo_ref, g1_ref, be1_ref,
                   w1_ref, b1_ref, w2_ref, b2_ref, g2_ref, be2_ref,
                   o_ref,
                   xs_ref):
    """All encoder layers, fused.  grid = (batch, layer).

    The (S, D) activation for the current batch element lives in the VMEM
    scratch `xs_ref` across the (sequential) layer axis; the HBM output is
    written only on the last layer.
    """
    l = pl.program_id(1)
    n_layer = pl.num_programs(1)

    @pl.when(l == 0)
    def _():
        xs_ref[...] = x_ref[...]

    x = xs_ref[...]                                   # (S, D) float32
    S, D = x.shape
    hd = D // n_head
    xb = x.astype(jnp.bfloat16)

    # ---- fused, head-batched QKV projection (one MXU launch) --------------
    # wqkv_ref: (3*n_head, D, hd)  ->  qkv: (3*n_head, S, hd)
    xh = jnp.broadcast_to(xb, (3 * n_head, S, D))
    qkv = jax.lax.dot_general(
        xh, wqkv_ref[...],
        (((2,), (1,)), ((0,), (0,))),
        preferred_element_type=jnp.float32) + bqkv_ref[...]
    # cheap leading-axis splits (no lane-dim slicing); 1/sqrt(hd) is already
    # folded into the q weights/bias.
    q = qkv[0:n_head]                                 # (n_head, S, hd)
    k = qkv[n_head:2 * n_head]
    v = qkv[2 * n_head:3 * n_head]

    # ---- scaled dot-product attention, head as leading batch dim ----------
    s = jax.lax.dot_general(
        q.astype(jnp.bfloat16), k.astype(jnp.bfloat16),
        (((2,), (2,)), ((0,), (0,))),
        preferred_element_type=jnp.float32)           # (n_head, S, S)
    m = jnp.max(s, axis=-1, keepdims=True)
    e = jnp.exp(s - m)
    p = e * pl.reciprocal(jnp.sum(e, axis=-1, keepdims=True), approx=True)
    ctx = jax.lax.dot_general(
        p.astype(jnp.bfloat16), v.astype(jnp.bfloat16),
        (((2,), (1,)), ((0,), (0,))),
        preferred_element_type=jnp.float32)           # (n_head, S, hd)

    # output projection folded per head: sum_h ctx_h @ Wo[h] == concat @ Wo
    attn_h = jax.lax.dot_general(
        ctx.astype(jnp.bfloat16), wo_ref[...],
        (((2,), (1,)), ((0,), (0,))),
        preferred_element_type=jnp.float32)           # (n_head, S, D)
    attn = jnp.sum(attn_h, axis=0) + bo_ref[...]

    # residual + LayerNorm 1 (dropout1 is identity at inference)
    x1 = _layer_norm(attn + x, g1_ref[...], be1_ref[...])

    # ---- position-wise feed-forward (no activation in the reference) ------
    h1 = jnp.dot(x1.astype(jnp.bfloat16), w1_ref[...],
                 preferred_element_type=jnp.float32) + b1_ref[...]
    h2 = jnp.dot(h1.astype(jnp.bfloat16), w2_ref[...],
                 preferred_element_type=jnp.float32) + b2_ref[...]

    # residual + LayerNorm 2 (dropout2 is identity at inference)
    x2 = _layer_norm(h2 + x1, g2_ref[...], be2_ref[...])

    xs_ref[...] = x2

    @pl.when(l == n_layer - 1)
    def _():
        o_ref[...] = x2


def encoder_layers_forward(x, packed, n_head):
    """Run all encoder layers in a single fused pallas_call."""
    B, S, D = x.shape
    L = packed["wqkv"].shape[0]
    H = packed["w1"].shape[-1]
    hd = D // n_head

    def wspec(shape):
        nd = len(shape)
        # per-layer weight block; leading layer dim squeezed out of the ref
        return pl.BlockSpec((None,) + shape, lambda b, l, nd=nd: (l,) + (0,) * nd)

    grid_spec = pltpu.PrefetchScalarGridSpec(
        num_scalar_prefetch=0,
        grid=(B, L),
        in_specs=[
            pl.BlockSpec((None, S, D), lambda b, l: (b, 0, 0)),      # x
            wspec((3 * n_head, D, hd)),                              # wqkv
            wspec((3 * n_head, 1, hd)),                              # bqkv
            wspec((n_head, hd, D)),                                  # wo
            wspec((1, D)),                                           # bo
            wspec((1, D)), wspec((1, D)),                            # g1, be1
            wspec((D, H)), wspec((1, H)),                            # w1, b1
            wspec((H, D)), wspec((1, D)),                            # w2, b2
            wspec((1, D)), wspec((1, D)),                            # g2, be2
        ],
        out_specs=pl.BlockSpec((None, S, D), lambda b, l: (b, 0, 0)),
        scratch_shapes=[pltpu.VMEM((S, D), jnp.float32)],            # resident x
    )

    return pl.pallas_call(
        functools.partial(encoder_kernel, n_head),
        out_shape=jax.ShapeDtypeStruct((B, S, D), jnp.float32),
        grid_spec=grid_spec,
        compiler_params=pltpu.CompilerParams(
            dimension_semantics=("parallel", "arbitrary"),
            vmem_limit_bytes=48 * 1024 * 1024,
        ),
    )(x, packed["wqkv"], packed["bqkv"], packed["wo"], packed["bo"],
      packed["g1"], packed["be1"], packed["w1"], packed["b1"],
      packed["w2"], packed["b2"], packed["g2"], packed["be2"])


# --------------------------- parameter creation ---------------------------- #

def _linear_params(key, fan_in, fan_out):
    # PyTorch nn.Linear default init: U(-1/sqrt(fan_in), 1/sqrt(fan_in))
    kw, kb = jax.random.split(key)
    bound = 1.0 / math.sqrt(fan_in)
    w = jax.random.uniform(kw, (fan_in, fan_out), jnp.float32, -bound, bound)
    b = jax.random.uniform(kb, (1, fan_out), jnp.float32, -bound, bound)
    return w, b


def _sinusoidal_pos_encoding(max_len, d_model):
    pos = jnp.arange(max_len, dtype=jnp.float32)[:, None]
    i2 = jnp.arange(0, d_model, 2, dtype=jnp.float32)
    div = jnp.power(10000.0, i2 / d_model)
    pe = jnp.zeros((max_len, d_model), dtype=jnp.float32)
    pe = pe.at[:, 0::2].set(jnp.sin(pos / div))
    pe = pe.at[:, 1::2].set(jnp.cos(pos / div))
    return pe


def init_encoder_params(key, enc_voc_size, max_len, d_model, ffn_hidden,
                        n_head, n_layer):
    hd = d_model // n_head
    scale = 1.0 / math.sqrt(hd)   # folded into Wq / bq (pre-scaled queries)

    keys = jax.random.split(key, 1 + n_layer)
    tok_emb = jax.random.normal(keys[0], (enc_voc_size, d_model), jnp.float32)
    pos_enc = _sinusoidal_pos_encoding(max_len, d_model)

    def to_heads_w(w):    # (D, D) -> (n_head, D, hd)
        return jnp.transpose(w.reshape(d_model, n_head, hd), (1, 0, 2))

    def to_heads_b(b):    # (1, D) -> (n_head, 1, hd)
        return b.reshape(n_head, hd)[:, None, :]

    wqkv_l, bqkv_l, wo_l, bo_l = [], [], [], []
    g1_l, be1_l, w1_l, b1_l, w2_l, b2_l, g2_l, be2_l = ([] for _ in range(8))

    for li in range(n_layer):
        lk = jax.random.split(keys[1 + li], 6)
        wq, bq = _linear_params(lk[0], d_model, d_model)
        wk, bk = _linear_params(lk[1], d_model, d_model)
        wv, bv = _linear_params(lk[2], d_model, d_model)
        wo, bo = _linear_params(lk[3], d_model, d_model)
        w1, b1 = _linear_params(lk[4], d_model, ffn_hidden)
        w2, b2 = _linear_params(lk[5], ffn_hidden, d_model)

        # fused, head-major QKV weights: (3*n_head, D, hd); q part pre-scaled
        wqkv_l.append(jnp.concatenate(
            [to_heads_w(wq) * scale, to_heads_w(wk), to_heads_w(wv)], axis=0))
        bqkv_l.append(jnp.concatenate(
            [to_heads_b(bq) * scale, to_heads_b(bk), to_heads_b(bv)], axis=0))
        wo_l.append(wo.reshape(n_head, hd, d_model))   # per-head output proj
        bo_l.append(bo)
        g1_l.append(jnp.ones((1, d_model), jnp.float32))
        be1_l.append(jnp.zeros((1, d_model), jnp.float32))
        w1_l.append(w1); b1_l.append(b1)
        w2_l.append(w2); b2_l.append(b2)
        g2_l.append(jnp.ones((1, d_model), jnp.float32))
        be2_l.append(jnp.zeros((1, d_model), jnp.float32))

    packed = dict(
        wqkv=jnp.stack(wqkv_l).astype(jnp.bfloat16),
        bqkv=jnp.stack(bqkv_l).astype(jnp.float32),
        wo=jnp.stack(wo_l).astype(jnp.bfloat16),
        bo=jnp.stack(bo_l).astype(jnp.float32),
        g1=jnp.stack(g1_l), be1=jnp.stack(be1_l),
        w1=jnp.stack(w1_l).astype(jnp.bfloat16),
        b1=jnp.stack(b1_l).astype(jnp.float32),
        w2=jnp.stack(w2_l).astype(jnp.bfloat16),
        b2=jnp.stack(b2_l).astype(jnp.float32),
        g2=jnp.stack(g2_l), be2=jnp.stack(be2_l),
    )
    return dict(tok_emb=tok_emb, pos_enc=pos_enc, packed=packed)


# ------------------------------ forward pass ------------------------------- #

def encoder_forward(params, token_ids, s_mask=None, *, n_head):
    # s_mask is ignored: the reference Encoder calls layer(x) without the mask.
    B, S = token_ids.shape
    # TransformerEmbedding: token embedding lookup + positional encoding
    # (gather kept in plain JAX; dropout is identity at inference).
    x = params["tok_emb"][token_ids] + params["pos_enc"][:S][None, :, :]
    x = x.astype(jnp.float32)
    return encoder_layers_forward(x, params["packed"], n_head)


# ---------------------------------- main ----------------------------------- #

if __name__ == "__main__":
    enc_voc_size = 100
    max_len = 16
    d_model = 32
    ffn_hidden = 64
    n_head = 4
    n_layer = 2
    B, S = 2, 8

    key = jax.random.PRNGKey(0)
    kp, kx = jax.random.split(key)
    params = init_encoder_params(kp, enc_voc_size, max_len, d_model,
                                 ffn_hidden, n_head, n_layer)
    token_ids = jax.random.randint(kx, (B, S), 0, enc_voc_size, dtype=jnp.int32)
    s_mask = None  # unused by the reference forward

    out = encoder_forward(params, token_ids, s_mask, n_head=n_head)
    out = jax.block_until_ready(out)
    assert out.shape == (B, S, d_model) and out.dtype == jnp.float32
    assert bool(jnp.all(jnp.isfinite(out)))
    print("KERNEL_OK")
</pallas_src>

<mosaic_0001>
module attributes {stable_mosaic.version = 11 : i64} {
  func.func @encoder_kernel(%arg0: i32, %arg1: i32, %arg2: memref<1x8x32xf32, #tpu.memory_space<vmem>>, %arg3: memref<1x12x32x8xbf16, #tpu.memory_space<vmem>>, %arg4: memref<1x12x1x8xf32, #tpu.memory_space<vmem>>, %arg5: memref<1x4x8x32xbf16, #tpu.memory_space<vmem>>, %arg6: memref<1x1x32xf32, #tpu.memory_space<vmem>>, %arg7: memref<1x1x32xf32, #tpu.memory_space<vmem>>, %arg8: memref<1x1x32xf32, #tpu.memory_space<vmem>>, %arg9: memref<1x32x64xbf16, #tpu.memory_space<vmem>>, %arg10: memref<1x1x64xf32, #tpu.memory_space<vmem>>, %arg11: memref<1x64x32xbf16, #tpu.memory_space<vmem>>, %arg12: memref<1x1x32xf32, #tpu.memory_space<vmem>>, %arg13: memref<1x1x32xf32, #tpu.memory_space<vmem>>, %arg14: memref<1x1x32xf32, #tpu.memory_space<vmem>>, %arg15: memref<1x8x32xf32, #tpu.memory_space<vmem>>, %arg16: memref<8x32xf32, #tpu.memory_space<vmem>>) attributes {dimension_semantics = [#tpu.dimension_semantics<parallel>, #tpu.dimension_semantics<arbitrary>], iteration_bounds = array<i64: 2, 2>, scalar_prefetch = 0 : i64, scratch_operands = 1 : i64, tpu.core_type = #tpu.core_type<tc>, window_params = [{transform_indices = @transform_0, window_bounds = array<i64: 1, 8, 32>}, {transform_indices = @transform_1, window_bounds = array<i64: 1, 12, 32, 8>}, {transform_indices = @transform_2, window_bounds = array<i64: 1, 12, 1, 8>}, {transform_indices = @transform_3, window_bounds = array<i64: 1, 4, 8, 32>}, {transform_indices = @transform_4, window_bounds = array<i64: 1, 1, 32>}, {transform_indices = @transform_5, window_bounds = array<i64: 1, 1, 32>}, {transform_indices = @transform_6, window_bounds = array<i64: 1, 1, 32>}, {transform_indices = @transform_7, window_bounds = array<i64: 1, 32, 64>}, {transform_indices = @transform_8, window_bounds = array<i64: 1, 1, 64>}, {transform_indices = @transform_9, window_bounds = array<i64: 1, 64, 32>}, {transform_indices = @transform_10, window_bounds = array<i64: 1, 1, 32>}, {transform_indices = @transform_11, window_bounds = array<i64: 1, 1, 32>}, {transform_indices = @transform_12, window_bounds = array<i64: 1, 1, 32>}, {transform_indices = @transform_13, window_bounds = array<i64: 1, 8, 32>}]} {
    %c0_i32 = arith.constant 0 : i32
    %0 = arith.cmpi eq, %arg1, %c0_i32 : i32
    %1 = arith.extui %0 : i1 to i32
    %c0_i32_0 = arith.constant 0 : i32
    %2 = arith.cmpi ne, %1, %c0_i32_0 : i32
    scf.if %2 {
      %c0_62 = arith.constant 0 : index
      %c0_63 = arith.constant 0 : index
      %c0_64 = arith.constant 0 : index
      %116 = vector.load %arg2[%c0_62, %c0_63, %c0_64] : memref<1x8x32xf32, #tpu.memory_space<vmem>>, vector<1x8x32xf32>
      %117 = vector.shape_cast %116 : vector<1x8x32xf32> to vector<8x32xf32>
      %c0_65 = arith.constant 0 : index
      %c0_66 = arith.constant 0 : index
      %118 = vector.load %arg16[%c0_65, %c0_66] : memref<8x32xf32, #tpu.memory_space<vmem>>, vector<8x32xf32>
      tpu.vector_store %arg16[%c0_65, %c0_66], %117 {strides = array<i32>} : memref<8x32xf32, #tpu.memory_space<vmem>>, vector<8x32xf32>,
    } else {
    }
    %c0 = arith.constant 0 : index
    %c0_1 = arith.constant 0 : index
    %3 = vector.load %arg16[%c0, %c0_1] : memref<8x32xf32, #tpu.memory_space<vmem>>, vector<8x32xf32>
    %4 = arith.truncf %3 : vector<8x32xf32> to vector<8x32xbf16>
    %5 = vector.shape_cast %4 : vector<8x32xbf16> to vector<1x8x32xbf16>
    %6 = vector.broadcast %5 : vector<1x8x32xbf16> to vector<12x8x32xbf16>
    %c0_2 = arith.constant 0 : index
    %c0_3 = arith.constant 0 : index
    %c0_4 = arith.constant 0 : index
    %c0_5 = arith.constant 0 : index
    %7 = vector.load %arg3[%c0_2, %c0_3, %c0_4, %c0_5] : memref<1x12x32x8xbf16, #tpu.memory_space<vmem>>, vector<1x12x32x8xbf16>
    %8 = vector.shape_cast %7 : vector<1x12x32x8xbf16> to vector<12x32x8xbf16>
    %cst = arith.constant dense<0.000000e+00> : vector<12x8x8xf32>
    %9 = tpu.matmul %6, %8, %cst {dimension_numbers = #tpu.dot_dimension_numbers<[2], [1], [1], [2], [0, 0, 0, 1, 1, 2], [0], [0]>} : vector<12x8x32xbf16>, vector<12x32x8xbf16>, vector<12x8x8xf32> -> vector<12x8x8xf32>
    %c0_6 = arith.constant 0 : index
    %c0_7 = arith.constant 0 : index
    %c0_8 = arith.constant 0 : index
    %c0_9 = arith.constant 0 : index
    %10 = vector.load %arg4[%c0_6, %c0_7, %c0_8, %c0_9] : memref<1x12x1x8xf32, #tpu.memory_space<vmem>>, vector<1x12x1x8xf32>
    %11 = vector.shape_cast %10 : vector<1x12x1x8xf32> to vector<12x1x8xf32>
    %12 = vector.broadcast %11 : vector<12x1x8xf32> to vector<12x8x8xf32>
    %13 = arith.addf %9, %12 : vector<12x8x8xf32>
    %14 = vector.extract_strided_slice %13 {offsets = [0, 0, 0], sizes = [4, 8, 8], strides = [1, 1, 1]} : vector<12x8x8xf32> to vector<4x8x8xf32>
    %15 = vector.extract_strided_slice %13 {offsets = [4, 0, 0], sizes = [4, 8, 8], strides = [1, 1, 1]} : vector<12x8x8xf32> to vector<4x8x8xf32>
    %16 = vector.extract_strided_slice %13 {offsets = [8, 0, 0], sizes = [4, 8, 8], strides = [1, 1, 1]} : vector<12x8x8xf32> to vector<4x8x8xf32>
    %17 = arith.truncf %14 : vector<4x8x8xf32> to vector<4x8x8xbf16>
    %18 = arith.truncf %15 : vector<4x8x8xf32> to vector<4x8x8xbf16>
    %cst_10 = arith.constant dense<0.000000e+00> : vector<4x8x8xf32>
    %19 = tpu.matmul %17, %18, %cst_10 {dimension_numbers = #tpu.dot_dimension_numbers<[2], [2], [1], [1], [0, 0, 0, 1, 1, 1], [0], [0]>} : vector<4x8x8xbf16>, vector<4x8x8xbf16>, vector<4x8x8xf32> -> vector<4x8x8xf32>
    %cst_11 = arith.constant dense<0xFF800000> : vector<4x8xf32>
    %20 = vector.multi_reduction <maximumf>, %19, %cst_11 [2] : vector<4x8x8xf32> to vector<4x8xf32>
    %21 = vector.shape_cast %20 : vector<4x8xf32> to vector<4x8x1xf32>
    %22 = vector.broadcast %21 : vector<4x8x1xf32> to vector<4x8x8xf32>
    %23 = arith.subf %19, %22 : vector<4x8x8xf32>
    %24 = math.exp %23 : vector<4x8x8xf32>
    %cst_12 = arith.constant dense<0.000000e+00> : vector<4x8xf32>
    %25 = vector.multi_reduction <add>, %24, %cst_12 [2] : vector<4x8x8xf32> to vector<4x8xf32>
    %26 = vector.shape_cast %25 : vector<4x8xf32> to vector<4x8x1xf32>
    %27 = tpu.reciprocal %26 {approx = true} : vector<4x8x1xf32> -> vector<4x8x1xf32>
    %28 = vector.broadcast %27 : vector<4x8x1xf32> to vector<4x8x8xf32>
    %29 = arith.mulf %24, %28 : vector<4x8x8xf32>
    %30 = arith.truncf %29 : vector<4x8x8xf32> to vector<4x8x8xbf16>
    %31 = arith.truncf %16 : vector<4x8x8xf32> to vector<4x8x8xbf16>
    %cst_13 = arith.constant dense<0.000000e+00> : vector<4x8x8xf32>
    %32 = tpu.matmul %30, %31, %cst_13 {dimension_numbers = #tpu.dot_dimension_numbers<[2], [1], [1], [2], [0, 0, 0, 1, 1, 2], [0], [0]>} : vector<4x8x8xbf16>, vector<4x8x8xbf16>, vector<4x8x8xf32> -> vector<4x8x8xf32>
    %33 = arith.truncf %32 : vector<4x8x8xf32> to vector<4x8x8xbf16>
    %c0_14 = arith.constant 0 : index
    %c0_15 = arith.constant 0 : index
    %c0_16 = arith.constant 0 : index
    %c0_17 = arith.constant 0 : index
    %34 = vector.load %arg5[%c0_14, %c0_15, %c0_16, %c0_17] : memref<1x4x8x32xbf16, #tpu.memory_space<vmem>>, vector<1x4x8x32xbf16>
    %35 = vector.shape_cast %34 : vector<1x4x8x32xbf16> to vector<4x8x32xbf16>
    %cst_18 = arith.constant dense<0.000000e+00> : vector<4x8x32xf32>
    %36 = tpu.matmul %33, %35, %cst_18 {dimension_numbers = #tpu.dot_dimension_numbers<[2], [1], [1], [2], [0, 0, 0, 1, 1, 2], [0], [0]>} : vector<4x8x8xbf16>, vector<4x8x32xbf16>, vector<4x8x32xf32> -> vector<4x8x32xf32>
    %cst_19 = arith.constant dense<0.000000e+00> : vector<8x32xf32>
    %37 = vector.multi_reduction <add>, %36, %cst_19 [0] : vector<4x8x32xf32> to vector<8x32xf32>
    %c0_20 = arith.constant 0 : index
    %c0_21 = arith.constant 0 : index
    %c0_22 = arith.constant 0 : index
    %38 = vector.load %arg6[%c0_20, %c0_21, %c0_22] : memref<1x1x32xf32, #tpu.memory_space<vmem>>, vector<1x1x32xf32>
    %39 = vector.shape_cast %38 : vector<1x1x32xf32> to vector<1x32xf32>
    %40 = vector.broadcast %39 : vector<1x32xf32> to vector<8x32xf32>
    %41 = arith.addf %37, %40 : vector<8x32xf32>
    %42 = arith.addf %41, %3 : vector<8x32xf32>
    %c0_23 = arith.constant 0 : index
    %c0_24 = arith.constant 0 : index
    %c0_25 = arith.constant 0 : index
    %43 = vector.load %arg7[%c0_23, %c0_24, %c0_25] : memref<1x1x32xf32, #tpu.memory_space<vmem>>, vector<1x1x32xf32>
    %44 = vector.shape_cast %43 : vector<1x1x32xf32> to vector<1x32xf32>
    %c0_26 = arith.constant 0 : index
    %c0_27 = arith.constant 0 : index
    %c0_28 = arith.constant 0 : index
    %45 = vector.load %arg8[%c0_26, %c0_27, %c0_28] : memref<1x1x32xf32, #tpu.memory_space<vmem>>, vector<1x1x32xf32>
    %46 = vector.shape_cast %45 : vector<1x1x32xf32> to vector<1x32xf32>
    %cst_29 = arith.constant dense<0.000000e+00> : vector<8xf32>
    %47 = vector.multi_reduction <add>, %42, %cst_29 [1] : vector<8x32xf32> to vector<8xf32>
    %48 = vector.shape_cast %47 : vector<8xf32> to vector<8x1xf32>
    %cst_30 = arith.constant 3.200000e+01 : f32
    %49 = vector.broadcast %cst_30 : f32 to vector<8x1xf32>
    %50 = arith.divf %48, %49 : vector<8x1xf32>
    %51 = vector.broadcast %50 : vector<8x1xf32> to vector<8x32xf32>
    %52 = arith.subf %42, %51 : vector<8x32xf32>
    %53 = arith.mulf %52, %52 : vector<8x32xf32>
    %cst_31 = arith.constant dense<0.000000e+00> : vector<8xf32>
    %54 = vector.multi_reduction <add>, %53, %cst_31 [1] : vector<8x32xf32> to vector<8xf32>
    %55 = vector.shape_cast %54 : vector<8xf32> to vector<8x1xf32>
    %cst_32 = arith.constant 3.200000e+01 : f32
    %56 = vector.broadcast %cst_32 : f32 to vector<8x1xf32>
    %57 = arith.divf %55, %56 : vector<8x1xf32>
    %58 = vector.broadcast %50 : vector<8x1xf32> to vector<8x32xf32>
    %59 = arith.subf %42, %58 : vector<8x32xf32>
    %cst_33 = arith.constant 9.99999996E-13 : f32
    %60 = vector.broadcast %cst_33 : f32 to vector<8x1xf32>
    %61 = arith.addf %57, %60 : vector<8x1xf32>
    %62 = math.rsqrt %61 : vector<8x1xf32>
    %63 = vector.broadcast %62 : vector<8x1xf32> to vector<8x32xf32>
    %64 = arith.mulf %59, %63 : vector<8x32xf32>
    %65 = vector.broadcast %44 : vector<1x32xf32> to vector<8x32xf32>
    %66 = arith.mulf %65, %64 : vector<8x32xf32>
    %67 = vector.broadcast %46 : vector<1x32xf32> to vector<8x32xf32>
    %68 = arith.addf %66, %67 : vector<8x32xf32>
    %69 = arith.truncf %68 : vector<8x32xf32> to vector<8x32xbf16>
    %c0_34 = arith.constant 0 : index
    %c0_35 = arith.constant 0 : index
    %c0_36 = arith.constant 0 : index
    %70 = vector.load %arg9[%c0_34, %c0_35, %c0_36] : memref<1x32x64xbf16, #tpu.memory_space<vmem>>, vector<1x32x64xbf16>
    %71 = vector.shape_cast %70 : vector<1x32x64xbf16> to vector<32x64xbf16>
    %cst_37 = arith.constant dense<0.000000e+00> : vector<8x64xf32>
    %72 = tpu.matmul %69, %71, %cst_37 {dimension_numbers = #tpu.dot_dimension_numbers<[1], [0], [0], [1], [0, 0, 1, 1], [], []>} : vector<8x32xbf16>, vector<32x64xbf16>, vector<8x64xf32> -> vector<8x64xf32>
    %c0_38 = arith.constant 0 : index
    %c0_39 = arith.constant 0 : index
    %c0_40 = arith.constant 0 : index
    %73 = vector.load %arg10[%c0_38, %c0_39, %c0_40] : memref<1x1x64xf32, #tpu.memory_space<vmem>>, vector<1x1x64xf32>
    %74 = vector.shape_cast %73 : vector<1x1x64xf32> to vector<1x64xf32>
    %75 = vector.broadcast %74 : vector<1x64xf32> to vector<8x64xf32>
    %76 = arith.addf %72, %75 : vector<8x64xf32>
    %77 = arith.truncf %76 : vector<8x64xf32> to vector<8x64xbf16>
    %c0_41 = arith.constant 0 : index
    %c0_42 = arith.constant 0 : index
    %c0_43 = arith.constant 0 : index
    %78 = vector.load %arg11[%c0_41, %c0_42, %c0_43] : memref<1x64x32xbf16, #tpu.memory_space<vmem>>, vector<1x64x32xbf16>
    %79 = vector.shape_cast %78 : vector<1x64x32xbf16> to vector<64x32xbf16>
    %cst_44 = arith.constant dense<0.000000e+00> : vector<8x32xf32>
    %80 = tpu.matmul %77, %79, %cst_44 {dimension_numbers = #tpu.dot_dimension_numbers<[1], [0], [0], [1], [0, 0, 1, 1], [], []>} : vector<8x64xbf16>, vector<64x32xbf16>, vector<8x32xf32> -> vector<8x32xf32>
    %c0_45 = arith.constant 0 : index
    %c0_46 = arith.constant 0 : index
    %c0_47 = arith.constant 0 : index
    %81 = vector.load %arg12[%c0_45, %c0_46, %c0_47] : memref<1x1x32xf32, #tpu.memory_space<vmem>>, vector<1x1x32xf32>
    %82 = vector.shape_cast %81 : vector<1x1x32xf32> to vector<1x32xf32>
    %83 = vector.broadcast %82 : vector<1x32xf32> to vector<8x32xf32>
    %84 = arith.addf %80, %83 : vector<8x32xf32>
    %85 = arith.addf %84, %68 : vector<8x32xf32>
    %c0_48 = arith.constant 0 : index
    %c0_49 = arith.constant 0 : index
    %c0_50 = arith.constant 0 : index
    %86 = vector.load %arg13[%c0_48, %c0_49, %c0_50] : memref<1x1x32xf32, #tpu.memory_space<vmem>>, vector<1x1x32xf32>
    %87 = vector.shape_cast %86 : vector<1x1x32xf32> to vector<1x32xf32>
    %c0_51 = arith.constant 0 : index
    %c0_52 = arith.constant 0 : index
    %c0_53 = arith.constant 0 : index
    %88 = vector.load %arg14[%c0_51, %c0_52, %c0_53] : memref<1x1x32xf32, #tpu.memory_space<vmem>>, vector<1x1x32xf32>
    %89 = vector.shape_cast %88 : vector<1x1x32xf32> to vector<1x32xf32>
    %cst_54 = arith.constant dense<0.000000e+00> : vector<8xf32>
    %90 = vector.multi_reduction <add>, %85, %cst_54 [1] : vector<8x32xf32> to vector<8xf32>
    %91 = vector.shape_cast %90 : vector<8xf32> to vector<8x1xf32>
    %cst_55 = arith.constant 3.200000e+01 : f32
    %92 = vector.broadcast %cst_55 : f32 to vector<8x1xf32>
    %93 = arith.divf %91, %92 : vector<8x1xf32>
    %94 = vector.broadcast %93 : vector<8x1xf32> to vector<8x32xf32>
    %95 = arith.subf %85, %94 : vector<8x32xf32>
    %96 = arith.mulf %95, %95 : vector<8x32xf32>
    %cst_56 = arith.constant dense<0.000000e+00> : vector<8xf32>
    %97 = vector.multi_reduction <add>, %96, %cst_56 [1] : vector<8x32xf32> to vector<8xf32>
    %98 = vector.shape_cast %97 : vector<8xf32> to vector<8x1xf32>
    %cst_57 = arith.constant 3.200000e+01 : f32
    %99 = vector.broadcast %cst_57 : f32 to vector<8x1xf32>
    %100 = arith.divf %98, %99 : vector<8x1xf32>
    %101 = vector.broadcast %93 : vector<8x1xf32> to vector<8x32xf32>
    %102 = arith.subf %85, %101 : vector<8x32xf32>
    %cst_58 = arith.constant 9.99999996E-13 : f32
    %103 = vector.broadcast %cst_58 : f32 to vector<8x1xf32>
    %104 = arith.addf %100, %103 : vector<8x1xf32>
    %105 = math.rsqrt %104 : vector<8x1xf32>
    %106 = vector.broadcast %105 : vector<8x1xf32> to vector<8x32xf32>
    %107 = arith.mulf %102, %106 : vector<8x32xf32>
    %108 = vector.broadcast %87 : vector<1x32xf32> to vector<8x32xf32>
    %109 = arith.mulf %108, %107 : vector<8x32xf32>
    %110 = vector.broadcast %89 : vector<1x32xf32> to vector<8x32xf32>
    %111 = arith.addf %109, %110 : vector<8x32xf32>
    %c0_59 = arith.constant 0 : index
    %c0_60 = arith.constant 0 : index
    %112 = vector.load %arg16[%c0_59, %c0_60] : memref<8x32xf32, #tpu.memory_space<vmem>>, vector<8x32xf32>
    tpu.vector_store %arg16[%c0_59, %c0_60], %111 {strides = array<i32>} : memref<8x32xf32, #tpu.memory_space<vmem>>, vector<8x32xf32>,
    %c1_i32 = arith.constant 1 : i32
    %113 = arith.cmpi eq, %arg1, %c1_i32 : i32
    %114 = arith.extui %113 : i1 to i32
    %c0_i32_61 = arith.constant 0 : i32
    %115 = arith.cmpi ne, %114, %c0_i32_61 : i32
    scf.if %115 {
      %c0_62 = arith.constant 0 : index
      %c0_63 = arith.constant 0 : index
      %c0_64 = arith.constant 0 : index
      %116 = vector.load %arg15[%c0_62, %c0_63, %c0_64] : memref<1x8x32xf32, #tpu.memory_space<vmem>>, vector<1x8x32xf32>
      %117 = vector.shape_cast %116 : vector<1x8x32xf32> to vector<8x32xf32>
      %118 = vector.shape_cast %111 : vector<8x32xf32> to vector<1x8x32xf32>
      tpu.vector_store %arg15[%c0_62, %c0_63, %c0_64], %118 {strides = array<i32>} : memref<1x8x32xf32, #tpu.memory_space<vmem>>, vector<1x8x32xf32>,
    } else {
    }
    return
  }
  func.func @transform_0(%arg0: i32, %arg1: i32) -> (i32, i32, i32) {
    %c0_i32 = arith.constant 0 : i32
    %c0_i32_0 = arith.constant 0 : i32
    %c0_i32_1 = arith.constant 0 : i32
    return %arg0, %c0_i32, %c0_i32_0 : i32, i32, i32
  }
  func.func @transform_1(%arg0: i32, %arg1: i32) -> (i32, i32, i32, i32) {
    %c0_i32 = arith.constant 0 : i32
    %c0_i32_0 = arith.constant 0 : i32
    %c0_i32_1 = arith.constant 0 : i32
    %c0_i32_2 = arith.constant 0 : i32
    return %arg1, %c0_i32, %c0_i32_0, %c0_i32_1 : i32, i32, i32, i32
  }
  func.func @transform_2(%arg0: i32, %arg1: i32) -> (i32, i32, i32, i32) {
    %c0_i32 = arith.constant 0 : i32
    %c0_i32_0 = arith.constant 0 : i32
    %c0_i32_1 = arith.constant 0 : i32
    %c0_i32_2 = arith.constant 0 : i32
    return %arg1, %c0_i32, %c0_i32_0, %c0_i32_1 : i32, i32, i32, i32
  }
  func.func @transform_3(%arg0: i32, %arg1: i32) -> (i32, i32, i32, i32) {
    %c0_i32 = arith.constant 0 : i32
    %c0_i32_0 = arith.constant 0 : i32
    %c0_i32_1 = arith.constant 0 : i32
    %c0_i32_2 = arith.constant 0 : i32
    return %arg1, %c0_i32, %c0_i32_0, %c0_i32_1 : i32, i32, i32, i32
  }
  func.func @transform_4(%arg0: i32, %arg1: i32) -> (i32, i32, i32) {
    %c0_i32 = arith.constant 0 : i32
    %c0_i32_0 = arith.constant 0 : i32
    %c0_i32_1 = arith.constant 0 : i32
    return %arg1, %c0_i32, %c0_i32_0 : i32, i32, i32
  }
  func.func @transform_5(%arg0: i32, %arg1: i32) -> (i32, i32, i32) {
    %c0_i32 = arith.constant 0 : i32
    %c0_i32_0 = arith.constant 0 : i32
    %c0_i32_1 = arith.constant 0 : i32
    return %arg1, %c0_i32, %c0_i32_0 : i32, i32, i32
  }
  func.func @transform_6(%arg0: i32, %arg1: i32) -> (i32, i32, i32) {
    %c0_i32 = arith.constant 0 : i32
    %c0_i32_0 = arith.constant 0 : i32
    %c0_i32_1 = arith.constant 0 : i32
    return %arg1, %c0_i32, %c0_i32_0 : i32, i32, i32
  }
  func.func @transform_7(%arg0: i32, %arg1: i32) -> (i32, i32, i32) {
    %c0_i32 = arith.constant 0 : i32
    %c0_i32_0 = arith.constant 0 : i32
    %c0_i32_1 = arith.constant 0 : i32
    return %arg1, %c0_i32, %c0_i32_0 : i32, i32, i32
  }
  func.func @transform_8(%arg0: i32, %arg1: i32) -> (i32, i32, i32) {
    %c0_i32 = arith.constant 0 : i32
    %c0_i32_0 = arith.constant 0 : i32
    %c0_i32_1 = arith.constant 0 : i32
    return %arg1, %c0_i32, %c0_i32_0 : i32, i32, i32
  }
  func.func @transform_9(%arg0: i32, %arg1: i32) -> (i32, i32, i32) {
    %c0_i32 = arith.constant 0 : i32
    %c0_i32_0 = arith.constant 0 : i32
    %c0_i32_1 = arith.constant 0 : i32
    return %arg1, %c0_i32, %c0_i32_0 : i32, i32, i32
  }
  func.func @transform_10(%arg0: i32, %arg1: i32) -> (i32, i32, i32) {
    %c0_i32 = arith.constant 0 : i32
    %c0_i32_0 = arith.constant 0 : i32
    %c0_i32_1 = arith.constant 0 : i32
    return %arg1, %c0_i32, %c0_i32_0 : i32, i32, i32
  }
  func.func @transform_11(%arg0: i32, %arg1: i32) -> (i32, i32, i32) {
    %c0_i32 = arith.constant 0 : i32
    %c0_i32_0 = arith.constant 0 : i32
    %c0_i32_1 = arith.constant 0 : i32
    return %arg1, %c0_i32, %c0_i32_0 : i32, i32, i32
  }
  func.func @transform_12(%arg0: i32, %arg1: i32) -> (i32, i32, i32) {
    %c0_i32 = arith.constant 0 : i32
    %c0_i32_0 = arith.constant 0 : i32
    %c0_i32_1 = arith.constant 0 : i32
    return %arg1, %c0_i32, %c0_i32_0 : i32, i32, i32
  }
  func.func @transform_13(%arg0: i32, %arg1: i32) -> (i32, i32, i32) {
    %c0_i32 = arith.constant 0 : i32
    %c0_i32_0 = arith.constant 0 : i32
    %c0_i32_1 = arith.constant 0 : i32
    return %arg0, %c0_i32, %c0_i32_0 : i32, i32, i32
  }
}

</mosaic_0001>

<bundles_post_ra>
// kernel: tpu_custom_call.1
= control target key start
LH: loop header
LB: loop body
LE: loop exit
PB: predicated region body
PF: predicated region fallthrough
CT: control target
= control target key end

     0   :  { %s3578_s0 = inlined_call_operand.vmem [shape: f32[2,8,32], index: 0, kind: input, shape index: {}]   ;;  %s3579_s1 = inlined_call_operand.vmem [shape: bf16[2,12,32,8], index: 1, kind: input, shape index: {}]   ;;  %s3580_s2 = inlined_call_operand.vmem [shape: f32[2,12,1,8], index: 2, kind: input, shape index: {}]   ;;  %s3581_s3 = inlined_call_operand.vmem [shape: bf16[2,4,8,32], index: 3, kind: input, shape index: {}]   ;;  %s3582_s4 = inlined_call_operand.vmem [shape: f32[2,1,32], index: 4, kind: input, shape index: {}]   ;;  %s3583_s5 = inlined_call_operand.vmem [shape: f32[2,1,32], index: 5, kind: input, shape index: {}]   ;;  %s3584_s6 = inlined_call_operand.vmem [shape: f32[2,1,32], index: 6, kind: input, shape index: {}]   ;;  %s3585_s7 = inlined_call_operand.vmem [shape: bf16[2,32,64], index: 7, kind: input, shape index: {}]   ;;  %s3586_s8 = inlined_call_operand.vmem [shape: f32[2,1,64], index: 8, kind: input, shape index: {}]   ;;  %s3587_s9 = inlined_call_operand.vmem [shape: bf16[2,64,32], index: 9, kind: input, shape index: {}]   ;;  %s3588_s10 = inlined_call_operand.vmem [shape: f32[2,1,32], index: 10, kind: input, shape index: {}]   ;;  %s3589_s11 = inlined_call_operand.vmem [shape: f32[2,1,32], index: 11, kind: input, shape index: {}]   ;;  %s3590_s12 = inlined_call_operand.vmem [shape: f32[2,1,32], index: 12, kind: input, shape index: {}]   ;;  %s3591_s13 = inlined_call_operand.hbm [shape: f32[2,8,32], index: 13, kind: output, shape index: {}]  }
   0x1   :  { %3607 = sst [smem:[#allocation19_spill]] %s3578_s0 }
   0x2   :  { %3608 = sst [smem:[#allocation20_spill]] %s3579_s1 }
   0x3   :  { %3609 = sst [smem:[#allocation21_spill]] %s3580_s2 }
   0x4   :  { %3610 = sst [smem:[#allocation22_spill]] %s3581_s3 }
   0x5   :  { %3611 = sst [smem:[#allocation23_spill]] %s3585_s7 }
   0x6   :  { %3612 = sst [smem:[#allocation24_spill]] %s3590_s12 }
   0x7   :  { %3613 = sst [smem:[#allocation25_spill]] %s3591_s13 }
   0x8   :  { %18 = vsyncpa [#allocation4], 0 }
   0x9   :  { %20 = vsyncpa [#allocation4 + $0x1], 0  ;;  %s3123_s25 = smov 0   ;;  %s3125_s26 = smov 0  }
   0xa   :  { %s3127_s27 = smov 0   ;;  %s3129_s28 = smov 0  }
   0xb   :  { %s3131_s29 = smov 0   ;;  %s3133_s30 = smov 0  }
   0xc   :  { %s3135_s14 = smov 0   ;;  %s3137_s15 = smov 0  }
   0xd LB: > { %3614 = sst [smem:[#allocation6_spill]] %s3020_s25  ;;  %s2475_s16 = sadd.s32 4294967295, %s3048_s15   ;;  %s3048_s15 = sphi %s3137_s15, %s26_s15   ;;  %s3044_s14 = sphi %s3135_s14, %s3655_s14   ;;  %s3040_s30 = sphi %s3133_s30, %s3654_s30   ;;  %s3036_s29 = sphi %s3131_s29, %s3653_s29   ;;  %s3032_s28 = sphi %s3129_s28, %s3652_s28   ;;  %s3028_s27 = sphi %s3127_s27, %s3651_s27   ;;  %s3024_s26 = sphi %s3125_s26, %s3650_s26   ;;  %s3020_s25 = sphi %s3123_s25, %s3649_s25  }
   0xe   : > { %3615 = sst [smem:[#allocation7_spill]] %s3024_s26  ;;  %s2476_s17 = sadd.s32 4294967294, %s3048_s15  }
   0xf   : > { %3616 = sst [smem:[#allocation8_spill]] %s3028_s27  ;;  %s35_s18 = sadd.s32 1, %s3040_s30 }
  0x10   : > { %3617 = sst [smem:[#allocation9_spill]] %s3032_s28  ;;  %p36_p0 = scmp.ge.s32.totalorder %s35_s18, 2 }
  0x11   : > { %3618 = sst [smem:[#allocation10_spill]] %s3036_s29  ;;  %s38_s19 = sadd.s32 1, %s3044_s14 }
  0x12   : > { %3619 = sst [smem:[#allocation11_spill]] %s3040_s30  ;;  %p393_p1 = scmp.ne.s32.totalorder %s3028_s27, %s3024_s26 }
  0x13   : > { %3620 = sst [smem:[#allocation12_spill]] %s3044_s14  ;;  %p394_p2 = scmp.eq.s32.totalorder %s2475_s16, 3 }
  0x14   : > { %3621 = sst [smem:[#allocation13_spill]] %s3048_s15  ;;  %s3657_s18 = smov (%p36_p0, %s35_s18), 0 }
  0x15   : > { %3622 = sst [smem:[#allocation14_spill]] %s3657_s18  ;;  %s3659_s19 = smov (!%p36_p0, %s38_s19), %s3044_s14 }
  0x16   : > { %p3172_p3 = por %p394_p2, %p393_p1  ;;  %p399_p4 = scmp.ne.s32.totalorder %s3024_s26, %s3020_s25 }
  0x17   : > { %p40_p5 = scmp.ge.s32.totalorder %s3659_s19, 2  ;;  %p400_p6 = scmp.eq.s32.totalorder %s2476_s17, 3 }
  0x18   : > { %s3623_s20 = scalar_select %p3172_p3, 1, 0 }
  0x19   : > { %p2479_p7 = scmp.ge.s32.totalorder %s3048_s15, 1  ;;  %p506_p8 = scmp.lt.s32.totalorder %s3048_s15, 5 }
  0x1a   : > { %3624 = sst [smem:[#allocation15_spill]] %s3623_s20  ;;  %s3661_s19 = smov (%p40_p5, %s3659_s19), 0 }
  0x1b   : > { %3625 = sst [smem:[#allocation16_spill]] %s3661_s19  ;;  %p3182_p9 = por %p400_p6, %p399_p4 }
  0x1c   : > { %p507_p10 = pnand %p2479_p7, %p506_p8  ;;  %s380_s22 = ssub.s32 %s3044_s14, %s3661_s19 }
  0x1d   : > { %s3626_s21 = scalar_select %p3182_p9, 1, 0 }
  0x1e   : > { %s383_s23 = sadd.s32 1, %s3028_s27  ;;  %p381_p11 = scmp.eq.s32.totalorder %s380_s22, 0 }
  0x1f   : > { %3627 = sst [smem:[#allocation17_spill]] %s3626_s21  ;;  %510 = sbr.rel (%p507_p10) target bundleno = 2371 (0x943), region = 72 }
  0x20   : > { %s3190_s24 = scalar_select %p381_p11, %s3028_s27, %s383_s23  }
  0x21   : > { %s3594_s16 = sand.u32 (!%p507_p10), 1, %s3024_s26   ;;  %p594_p12 = scmp.lt.s32.totalorder (!%p507_p10), %s3036_s29, 1 }
  0x22   : > { %3628 = sst [smem:[#allocation18_spill]] %s3190_s24  ;;  %s3196_s17 = sshll.u32 (!%p507_p10), %s3594_s16, 3 }
  0x23   : > { %p598_p13 = scmp.lt.s32.totalorder (!%p507_p10), %s3032_s28, 1  ;;  %s3629_s0 = sld [smem:[#allocation19_spill]] (!%p507_p10) }
  0x24   : > { %s3630_s1 = sld [smem:[#allocation20_spill]] (!%p507_p10)  ;;  %s3631_s3 = sld [smem:[#allocation22_spill]] (!%p507_p10) }
  0x25   : > { %s3632_s2 = sld [smem:[#allocation21_spill]] (!%p507_p10)  ;;  %s3633_s7 = sld [smem:[#allocation23_spill]] (!%p507_p10) }
  0x26   : > { %s595_s18 = scalar_select %p594_p12, %s3036_s29, 1 }
  0x27   : > { %s3201_s30 = scalar_select %p598_p13, %s3032_s28, 1 }
  0x28   : > { %s2481_s22 = sshll.u32 %s595_s18, 3  ;;  %s593_s29 = scalar_lea.vmem [#allocation3], %s3196_s17 }
  0x29   : > { %s597_s16 = scalar_lea.vmem %s3629_s0, %s2481_s22  ;;  %s2829_s14 = smul.u32 192, %s3201_s30 }
  0x2a   : > { %s2830_s24 = smul.u32 12, %s3201_s30  ;;  %s2570_s27 = sshll.u32 %s3201_s30, 4 }
  0x2b   : > { %s3212_s15 = scalar_lea.vmem %s3630_s1, %s2829_s14  ;;  %s3217_s26 = scalar_lea.vmem %s3631_s3, %s2570_s27 }
  0x2c   : > { %s3222_s19 = scalar_lea.vmem %s3632_s2, %s2830_s24  ;;  %s3239_s3 = scalar_lea.vmem %s3633_s7, %s2570_s27 }
  0x2d   : > { %s628_s18 = scalar_lea.vmem %s3586_s8, %s3201_s30  ;;  %s2572_s2 = sshll.u32 %s3201_s30, 5 }
  0x2e   : > { %s636_s0 = scalar_lea.vmem %s3588_s10, %s3201_s30  ;;  %s3253_s25 = scalar_lea.vmem %s3587_s9, %s2572_s2 }
  0x2f   : > { %s639_s13 = scalar_lea.vmem %s3589_s11, %s3201_s30  ;;  %s3634_s1 = sld [smem:[#allocation24_spill]] }
  0x30   : > { %s3635_s24 = sld [smem:[#allocation9_spill]] }
  0x35   : > { %s642_s7 = scalar_lea.vmem %s3634_s1, %s3201_s30 }
  0x36   : > { %p2489_p0 = scmp.ne.s32.totalorder %s3635_s24, 0 }
  0x37   : > { %v648_v0 = vld [vmem:[%s597_s16] sm:$0xff] (!%p2489_p0)  ;;  %vm649_vm0 = vcmask (!%p2489_p0), 261120  }
  0x38   : > { %647 = sbr.rel (%p2489_p0) target bundleno = 63 (0x3f), region = 76  ;;  %650 = vst.msk [vmem:[#allocation2] sm:$0xff] (!%p2489_p0), %vm649_vm0, %v648_v0 }
  0x3f PF: > { %v2904_v1 = vld [vmem:[%s3212_s15] sm:$0xff]   ;;  %v3050_v2 = vmov 0.0   ;;  %v2905_v3 = vld [vmem:[%s3212_s15 + $0x10] sm:$0xff]   ;;  %v2906_v4 = vld [vmem:[%s3212_s15 + $0x8] sm:$0xff]   ;;  %vm3051_vm1 = vmmov 0   ;;  %vm797_vm2 = vcmask 261120   ;;  %s3637_s16 = scalar_lea.vmem %s3583_s5, %s3201_s30  ;;  %s3638_s23 = scalar_lea.vmem %s3584_s6, %s3201_s30 }
  0x40   : > { %2641 = vmatprep.subr.bf16.mxu0 %v3050_v2  ;;  %2649 = vmatprep.subr.bf16.mxu1 %v3050_v2  ;;  %v2907_v5 = vld [vmem:[%s3212_s15 + $0x18] sm:$0xff]   ;;  %v3277_v6 = vld [vmem:[#allocation2] sm:$0xff]  ;;  %v2909_v9 = vld [vmem:[%s3212_s15 + $0x30] sm:$0xff]   ;;  %vm1421_vm3 = vcmask 64512   ;;  %vm1661_vm4 = vcmask 1043456   ;;  %vm2188_vm5 = vcmask 523264  }
  0x41   : > { %2642 = vmatpush3.bf16.msra.mxu0 %v2904_v1  ;;  %2645 = vmatprep.mubr.msk.bf16.mxu0 %vm3051_vm1, %v3050_v2  ;;  %v3281_v7 = vpack.c.bf16 %v3277_v6, %v3277_v6  ;;  %v2908_v8 = vld [vmem:[%s3212_s15 + $0x20] sm:$0xff]   ;;  %v2910_v10 = vld [vmem:[%s3212_s15 + $0x28] sm:$0xff]   ;;  %v2911_v11 = vld [vmem:[%s3212_s15 + $0x38] sm:$0xff]   ;;  %s3640_s24 = sld [smem:[#allocation9_spill]] }
  0x42   : > { %2650 = vmatpush3.bf16.msra.mxu1 %v2905_v3  ;;  %2643 = vmatprep.subr.bf16.mxu0 %v3050_v2  ;;  %v2912_v12 = vld [vmem:[%s3212_s15 + $0x40] sm:$0xff]   ;;  %v2913_v13 = vld [vmem:[%s3212_s15 + $0x50] sm:$0xff]   ;;  %v2914_v14 = vld [vmem:[%s3212_s15 + $0x48] sm:$0xff]  }
  0x43   : > { %2651 = vmatprep.subr.bf16.mxu1 %v3050_v2  ;;  %2653 = vmatprep.mubr.msk.bf16.mxu1 %vm3051_vm1, %v3050_v2  ;;  %v2915_v15 = vld [vmem:[%s3212_s15 + $0x58] sm:$0xff]   ;;  %v2916_v16 = vld [vmem:[%s3212_s15 + $0x60] sm:$0xff]   ;;  %v2917_v17 = vld [vmem:[%s3212_s15 + $0x70] sm:$0xff]  }
  0x44   : > { %v2918_v18 = vld [vmem:[%s3212_s15 + $0x68] sm:$0xff]   ;;  %v2919_v19 = vld [vmem:[%s3212_s15 + $0x78] sm:$0xff]   ;;  %v2920_v20 = vld [vmem:[%s3212_s15 + $0x80] sm:$0xff]  }
  0x45   : > { %2644 = vmatpush3.bf16.msra.mxu0 %v2906_v4  ;;  %v2921_v21 = vld [vmem:[%s3212_s15 + $0x90] sm:$0xff]   ;;  %v2922_v22 = vld [vmem:[%s3212_s15 + $0x88] sm:$0xff]   ;;  %v2923_v23 = vld [vmem:[%s3212_s15 + $0x98] sm:$0xff]  }
  0x46   : > { %2652 = vmatpush3.bf16.msra.mxu1 %v2907_v5  ;;  %2657 = vmatprep.subr.bf16.mxu0 %v3050_v2  ;;  %v2924_v24 = vld [vmem:[%s3212_s15 + $0xa0] sm:$0xff]   ;;  %v2925_v25 = vld [vmem:[%s3212_s15 + $0xb0] sm:$0xff]   ;;  %v2926_v26 = vld [vmem:[%s3212_s15 + $0xa8] sm:$0xff]  }
  0x47   : > { %2665 = vmatprep.subr.bf16.mxu1 %v3050_v2  ;;  %v2927_v27 = vld [vmem:[%s3212_s15 + $0xb8] sm:$0xff]   ;;  %v2494_v44 = vld [vmem:[%s3222_s19 + $0x4] ss:$0 sm:$0xff]  ;;  %v2495_v45 = vld [vmem:[%s3222_s19 + $0x5] ss:$0 sm:$0xff]  ;;  %p2565_p1 = scmp.ne.s32.totalorder %s3640_s24, 1 }
  0x48   : > { %2646 = vmatmul.mubr.msk.bf16.vlgmr.msra.gmra.mrb[0].mxu0 %vm797_vm2, %v3281_v7  ;;  %v2490_v56 = vld [vmem:[%s3222_s19] ss:$0 sm:$0xff]  ;;  %v2491_v59 = vld [vmem:[%s3222_s19 + $0x1] ss:$0 sm:$0xff]  ;;  %v2496_v62 = vld [vmem:[%s3222_s19 + $0x6] ss:$0 sm:$0xff] }
  0x49   : > { %2654 = vmatmul.mubr.msk.bf16.vlgmr.msra.gmra.mrb[0].mxu1 %vm797_vm2, %v3281_v7  ;;  %2658 = vmatpush3.bf16.msra.mxu0 %v2908_v8  ;;  %v2497_v0 = vld [vmem:[%s3222_s19 + $0x7] ss:$0 sm:$0xff] }
  0x4a   : > { %2666 = vmatpush3.bf16.msra.mxu1 %v2909_v9  ;;  %2659 = vmatprep.subr.bf16.mxu0 %v3050_v2 }
  0x4b   : > { %2667 = vmatprep.subr.bf16.mxu1 %v3050_v2  ;;  %2661 = vmatprep.mubr.msk.bf16.mxu0 %vm3051_vm1, %v3050_v2 }
  0x4c   : > { %2669 = vmatprep.mubr.msk.bf16.mxu1 %vm3051_vm1, %v3050_v2 }
  0x4d   : > { %2660 = vmatpush3.bf16.msra.mxu0 %v2910_v10 }
  0x4e   : > { %2668 = vmatpush3.bf16.msra.mxu1 %v2911_v11  ;;  %2673 = vmatprep.subr.bf16.mxu0 %v3050_v2 }
  0x4f   : > { %2681 = vmatprep.subr.bf16.mxu1 %v3050_v2 }
  0x50   : > { %2662 = vmatmul.mubr.msk.bf16.vlgmr.msra.gmra.mrb[4].mxu0 %vm797_vm2, %v3281_v7 }
  0x51   : > { %2670 = vmatmul.mubr.msk.bf16.vlgmr.msra.gmra.mrb[4].mxu1 %vm797_vm2, %v3281_v7  ;;  %2674 = vmatpush3.bf16.msra.mxu0 %v2912_v12 }
  0x52   : > { %2682 = vmatpush3.bf16.msra.mxu1 %v2913_v13  ;;  %2675 = vmatprep.subr.bf16.mxu0 %v3050_v2 }
  0x53   : > { %2683 = vmatprep.subr.bf16.mxu1 %v3050_v2  ;;  %2677 = vmatprep.mubr.msk.bf16.mxu0 %vm3051_vm1, %v3050_v2 }
  0x54   : > { %2685 = vmatprep.mubr.msk.bf16.mxu1 %vm3051_vm1, %v3050_v2 }
  0x55   : > { %2676 = vmatpush3.bf16.msra.mxu0 %v2914_v14 }
  0x56   : > { %2684 = vmatpush3.bf16.msra.mxu1 %v2915_v15  ;;  %2689 = vmatprep.subr.bf16.mxu0 %v3050_v2 }
  0x57   : > { %2697 = vmatprep.subr.bf16.mxu1 %v3050_v2 }
  0x58   : > { %2678 = vmatmul.mubr.msk.bf16.vlgmr.msra.gmra.mrb[8].mxu0 %vm797_vm2, %v3281_v7 }
  0x59   : > { %2686 = vmatmul.mubr.msk.bf16.vlgmr.msra.gmra.mrb[8].mxu1 %vm797_vm2, %v3281_v7  ;;  %2690 = vmatpush3.bf16.msra.mxu0 %v2916_v16  ;;  %v2492_v16 = vld [vmem:[%s3222_s19 + $0x2] ss:$0 sm:$0xff] }
  0x5a   : > { %2698 = vmatpush3.bf16.msra.mxu1 %v2917_v17  ;;  %2691 = vmatprep.subr.bf16.mxu0 %v3050_v2 }
  0x5b   : > { %2699 = vmatprep.subr.bf16.mxu1 %v3050_v2  ;;  %2693 = vmatprep.mubr.msk.bf16.mxu0 %vm3051_vm1, %v3050_v2 }
  0x5c   : > { %2701 = vmatprep.mubr.msk.bf16.mxu1 %vm3051_vm1, %v3050_v2 }
  0x5d   : > { %2692 = vmatpush3.bf16.msra.mxu0 %v2918_v18 }
  0x5e   : > { %2700 = vmatpush3.bf16.msra.mxu1 %v2919_v19  ;;  %2705 = vmatprep.subr.bf16.mxu0 %v3050_v2  ;;  %v2493_v19 = vld [vmem:[%s3222_s19 + $0x3] ss:$0 sm:$0xff] }
  0x5f   : > { %2713 = vmatprep.subr.bf16.mxu1 %v3050_v2 }
  0x60   : > { %2694 = vmatmul.mubr.msk.bf16.vlgmr.msra.gmra.mrb[12].mxu0 %vm797_vm2, %v3281_v7 }
  0x61   : > { %2702 = vmatmul.mubr.msk.bf16.vlgmr.msra.gmra.mrb[12].mxu1 %vm797_vm2, %v3281_v7  ;;  %2706 = vmatpush3.bf16.msra.mxu0 %v2920_v20 }
  0x62   : > { %2707 = vmatprep.subr.bf16.mxu0 %v3050_v2  ;;  %2709 = vmatprep.mubr.msk.bf16.mxu0 %vm3051_vm1, %v3050_v2 }
  0x63   : > { %2717 = vmatprep.mubr.msk.bf16.mxu1 %vm3051_vm1, %v3050_v2  ;;  %2714 = vmatpush3.bf16.msra.mxu1 %v2921_v21 }
  0x64   : > { %2715 = vmatprep.subr.bf16.mxu1 %v3050_v2 }
  0x65   : > { %2708 = vmatpush3.bf16.msra.mxu0 %v2922_v22 }
  0x66   : > { %2721 = vmatprep.subr.bf16.mxu0 %v3050_v2 }
  0x67   : > { %2716 = vmatpush3.bf16.msra.mxu1 %v2923_v23 }
  0x68   : > { %2710 = vmatmul.mubr.msk.bf16.vlgmr.msra.gmra.mrb[16].mxu0 %vm797_vm2, %v3281_v7  ;;  %2729 = vmatprep.subr.bf16.mxu1 %v3050_v2 }
  0x69   : > { %2725 = vmatprep.mubr.msk.bf16.mxu0 %vm3051_vm1, %v3050_v2  ;;  %2722 = vmatpush3.bf16.msra.mxu0 %v2924_v24 }
  0x6a   : > { %2718 = vmatmul.mubr.msk.bf16.vlgmr.msra.gmra.mrb[16].mxu1 %vm797_vm2, %v3281_v7  ;;  %2723 = vmatprep.subr.bf16.mxu0 %v3050_v2 }
  0x6b   : > { %2730 = vmatpush3.bf16.msra.mxu1 %v2925_v25  ;;  %2733 = vmatprep.mubr.msk.bf16.mxu1 %vm3051_vm1, %v3050_v2 }
  0x6c   : > { %2731 = vmatprep.subr.bf16.mxu1 %v3050_v2 }
  0x6d   : > { %2724 = vmatpush3.bf16.msra.mxu0 %v2926_v26  ;;  %v2498_v26 = vld [vmem:[%s3222_s19 + $0x8] ss:$0 sm:$0xff] }
  0x6e   : > { %2737 = vmatprep.subr.bf16.mxu0 %v3050_v2 }
  0x6f   : > { %2732 = vmatpush3.bf16.msra.mxu1 %v2927_v27 }
  0x70   : > { %2743 = vmatprep.subr.bf16.mxu1 %v3050_v2  ;;  %2726 = vmatmul.mubr.msk.bf16.vlgmr.msra.gmra.mrb[20].mxu0 %vm797_vm2, %v3281_v7 }
  0x71   : > { %2739 = vmatprep.mubr.msk.bf16.mxu0 %vm3051_vm1, %v3050_v2 }
  0x72   : > { %2734 = vmatmul.mubr.msk.bf16.vlgmr.msra.gmra.mrb[20].mxu1 %vm797_vm2, %v3281_v7 }
  0x73   : > { %2745 = vmatprep.mubr.msk.bf16.mxu1 %vm3051_vm1, %v3050_v2 }
 0x11b   : > { %v835_v28 = vpop.f32.mrb[0].mxu0 }
 0x11c   : > { %v2647_v29 = vpop.f32.mrb[1].mxu0  ;;  %v887_v30 = vpop.f32.mrb[0].mxu1  ;;  %v836_v63 = vadd.f32 %v2490_v56, %v835_v28  ;;  %v2499_v28 = vld [vmem:[%s3222_s19 + $0x9] ss:$0 sm:$0xff] }
 0x11d   : > { %v838_v31 = vpop.f32.mrb[2].mxu0  ;;  %v2655_v32 = vpop.f32.mrb[1].mxu1  ;;  %v888_v1 = vadd.f32 %v2491_v59, %v887_v30 }
 0x11e   : > { %v2648_v33 = vpop.f32.mrb[3].mxu0  ;;  %v890_v34 = vpop.f32.mrb[2].mxu1  ;;  %v1413_v11 = vpack.c.bf16 %v836_v63, %v836_v63 }
 0x11f   : > { %v2656_v35 = vpop.f32.mrb[3].mxu1  ;;  %v1414_v15 = vpack.c.bf16 %v888_v1, %v888_v1 }
 0x123   : > { %v939_v36 = vpop.f32.mrb[4].mxu0 }
 0x124   : > { %v2663_v37 = vpop.f32.mrb[5].mxu0  ;;  %v991_v38 = vpop.f32.mrb[4].mxu1  ;;  %v940_v22 = vadd.f32 %v2492_v16, %v939_v36 }
 0x125   : > { %v942_v39 = vpop.f32.mrb[6].mxu0  ;;  %v2671_v40 = vpop.f32.mrb[5].mxu1  ;;  %v992_v23 = vadd.f32 %v2493_v19, %v991_v38 }
 0x126   : > { %v2664_v41 = vpop.f32.mrb[7].mxu0  ;;  %v994_v42 = vpop.f32.mrb[6].mxu1  ;;  %v1415_v24 = vpack.c.bf16 %v940_v22, %v940_v22 }
 0x127   : > { %v2672_v43 = vpop.f32.mrb[7].mxu1  ;;  %v1416_v25 = vpack.c.bf16 %v992_v23, %v992_v23 }
 0x12b   : > { %v1043_v46 = vpop.f32.mrb[8].mxu0 }
 0x12c   : > { %v1044_v47 = vadd.f32 %v2494_v44, %v1043_v46  ;;  %v1095_v48 = vpop.f32.mrb[8].mxu1  ;;  %v2679_v49 = vpop.f32.mrb[9].mxu0 }
 0x12d   : > { %v1096_v50 = vadd.f32 %v2495_v45, %v1095_v48  ;;  %v1046_v51 = vpop.f32.mrb[10].mxu0  ;;  %v2687_v52 = vpop.f32.mrb[9].mxu1 }
 0x12e   : > { %v1417_v53 = vpack.c.bf16 %v1044_v47, %v1044_v47  ;;  %v2680_v54 = vpop.f32.mrb[11].mxu0  ;;  %v1098_v55 = vpop.f32.mrb[10].mxu1 }
 0x12f   : > { %v1418_v57 = vpack.c.bf16 %v1096_v50, %v1096_v50  ;;  %v2688_v58 = vpop.f32.mrb[11].mxu1 }
 0x130   : > { %v1426_v60 = vsel %vm1421_vm3, %v1417_v53, 0 }
 0x131   : > { %v1472_v61 = vsel %vm1421_vm3, %v1418_v57, 0  ;;  %2738 = vmatpush3.bf16.xpose.msra.mxu0 %v1426_v60 }
 0x132   : > { %2744 = vmatpush3.bf16.xpose.msra.mxu1 %v1472_v61  ;;  %2749 = vmatprep.subr.bf16.mxu0 %v3050_v2 }
 0x133   : > { %v1147_v3 = vpop.f32.mrb[12].mxu0  ;;  %2755 = vmatprep.subr.bf16.mxu1 %v3050_v2 }
 0x134   : > { %v1148_v4 = vadd.f32 %v2496_v62, %v1147_v3  ;;  %v1199_v5 = vpop.f32.mrb[12].mxu1  ;;  %v2695_v7 = vpop.f32.mrb[13].mxu0 }
 0x135   : > { %v1200_v8 = vadd.f32 %v2497_v0, %v1199_v5  ;;  %v1150_v9 = vpop.f32.mrb[14].mxu0  ;;  %v2703_v10 = vpop.f32.mrb[13].mxu1 }
 0x136   : > { %v1419_v12 = vpack.c.bf16 %v1148_v4, %v1148_v4  ;;  %v2696_v13 = vpop.f32.mrb[15].mxu0  ;;  %v1202_v14 = vpop.f32.mrb[14].mxu1 }
 0x137   : > { %v1420_v17 = vpack.c.bf16 %v1200_v8, %v1200_v8  ;;  %v2704_v18 = vpop.f32.mrb[15].mxu1 }
 0x138   : > { %v1518_v20 = vsel %vm1421_vm3, %v1419_v12, 0  ;;  %2740 = vmatmul.mubr.msk.bf16.vlgmr.msra.gmra.mrb[24].mxu0 %vm1421_vm3, %v1413_v11 }
 0x139   : > { %v1564_v21 = vsel %vm1421_vm3, %v1420_v17, 0  ;;  %2746 = vmatmul.mubr.msk.bf16.vlgmr.msra.gmra.mrb[24].mxu1 %vm1421_vm3, %v1414_v15  ;;  %2750 = vmatpush3.bf16.xpose.msra.mxu0 %v1518_v20 }
 0x13a   : > { %2756 = vmatpush3.bf16.xpose.msra.mxu1 %v1564_v21  ;;  %2751 = vmatprep.mubr.msk.bf16.mxu0 %vm3051_vm1, %v3050_v2 }
 0x13b   : > { %2757 = vmatprep.mubr.msk.bf16.mxu1 %vm3051_vm1, %v3050_v2  ;;  %2761 = vmatprep.subr.bf16.mxu0 %v3050_v2  ;;  %v1251_v27 = vpop.f32.mrb[16].mxu0 }
 0x13c   : > { %2767 = vmatprep.subr.bf16.mxu1 %v3050_v2  ;;  %v1252_v29 = vadd.f32 %v2498_v26, %v1251_v27  ;;  %v2711_v30 = vpop.f32.mrb[17].mxu0 }
 0x13d   : > { %v1254_v31 = vpop.f32.mrb[18].mxu0  ;;  %v1303_v32 = vpop.f32.mrb[16].mxu1  ;;  %v2500_v30 = vld [vmem:[%s3222_s19 + $0xa] ss:$0 sm:$0xff] }
 0x13e   : > { %v1654_v33 = vpack.c.bf16 %v1252_v29, %v1252_v29  ;;  %v2712_v34 = vpop.f32.mrb[19].mxu0  ;;  %v1304_v35 = vadd.f32 %v2499_v28, %v1303_v32  ;;  %v2719_v36 = vpop.f32.mrb[17].mxu1 }
 0x13f   : > { %v1306_v37 = vpop.f32.mrb[18].mxu1 }
 0x140   : > { %2752 = vmatmul.mubr.msk.bf16.vlgmr.msra.gmra.mrb[28].mxu0 %vm1421_vm3, %v1415_v24  ;;  %v1663_v38 = vsel %vm1661_vm4, %v1654_v33, 0  ;;  %v1655_v39 = vpack.c.bf16 %v1304_v35, %v1304_v35  ;;  %v2720_v40 = vpop.f32.mrb[19].mxu1  ;;  %v2501_v33 = vld [vmem:[%s3222_s19 + $0xb] ss:$0 sm:$0xff] }
 0x141   : > { %2758 = vmatmul.mubr.msk.bf16.vlgmr.msra.gmra.mrb[28].mxu1 %vm1421_vm3, %v1416_v25  ;;  %2763 = vmatprep.mubr.msk.bf16.mxu0 %vm3051_vm1, %v3050_v2 }
 0x142   : > { %2769 = vmatprep.mubr.msk.bf16.mxu1 %vm3051_vm1, %v3050_v2  ;;  %2762 = vmatpush3.bf16.msra.mxu0 %v1663_v38  ;;  %v1709_v41 = vsel %vm1661_vm4, %v1655_v39, 0 }
 0x143   : > { %2773 = vmatprep.subr.bf16.mxu0 %v3050_v2  ;;  %2768 = vmatpush3.bf16.msra.mxu1 %v1709_v41  ;;  %v3407_v42 = vpop.f32.mrb[20].mxu0 }
 0x144   : > { %2779 = vmatprep.subr.bf16.mxu1 %v3050_v2  ;;  %v2727_v44 = vpop.f32.mrb[21].mxu0  ;;  %v1356_v31 = vadd.f32 %v2500_v30, %v3407_v42 }
 0x145   : > { %v3409_v43 = vpop.f32.mrb[20].mxu1  ;;  %v1358_v46 = vpop.f32.mrb[22].mxu0 }
 0x146   : > { %v2735_v45 = vpop.f32.mrb[21].mxu1  ;;  %v2728_v48 = vpop.f32.mrb[23].mxu0  ;;  %v1656_v35 = vpack.c.bf16 %v1356_v31, %v1356_v31  ;;  %v1408_v36 = vadd.f32 %v2501_v33, %v3409_v43  ;;  %v1847_v43 = vld [vmem:[%s3217_s26] sm:$0xf] }
 0x147   : > { %v1410_v47 = vpop.f32.mrb[22].mxu1 }
 0x148   : > { %v2736_v49 = vpop.f32.mrb[23].mxu1  ;;  %v1755_v41 = vsel %vm1661_vm4, %v1656_v35, 0  ;;  %v1657_v44 = vpack.c.bf16 %v1408_v36, %v1408_v36 }
 0x14a   : > { %v1801_v47 = vsel %vm1661_vm4, %v1657_v44, 0 }
 0x20b   : > { %v1462_v50 = vpop.f32.mrb[24].mxu0 }
 0x20c   : > { %v1508_v51 = vpop.f32.mrb[24].mxu1  ;;  %v2741_v52 = vpop.f32.mrb[25].mxu0  ;;  %v1606_v53 = vsel %vm1421_vm3, %v1462_v50, -inf }
 0x20d   : > { %v2747_v54 = vpop.f32.mrb[25].mxu1  ;;  %1607 = vmax.xlane.f32.xlu0 %v1606_v53  ;;  %v1465_v55 = vpop.f32.mrb[26].mxu0  ;;  %v1609_v59 = vsel %vm1421_vm3, %v1508_v51, -inf }
 0x20e   : > { %v1511_v56 = vpop.f32.mrb[26].mxu1  ;;  %v2742_v57 = vpop.f32.mrb[27].mxu0  ;;  %v1848_v54 = vld [vmem:[%s3217_s26 + $0x4] sm:$0xf] }
 0x20f   : > { %v2748_v58 = vpop.f32.mrb[27].mxu1  ;;  %v1901_v55 = vsel %vm1661_vm4, %v1848_v54, 0  ;;  %v1849_v56 = vld [vmem:[%s3217_s26 + $0x8] sm:$0xf] }
 0x211   : > { %1610 = vmax.xlane.f32.xlu0 %v1609_v59 }
 0x213   : > { %v1554_v60 = vpop.f32.mrb[28].mxu0 }
 0x214   : > { %v1600_v61 = vpop.f32.mrb[28].mxu1  ;;  %v2753_v62 = vpop.f32.mrb[29].mxu0  ;;  %v1612_v63 = vsel %vm1421_vm3, %v1554_v60, -inf }
 0x215   : > { %v2759_v0 = vpop.f32.mrb[29].mxu1  ;;  %1613 = vmax.xlane.f32.xlu1 %v1612_v63  ;;  %v1557_v1 = vpop.f32.mrb[30].mxu0  ;;  %v1615_v7 = vsel %vm1421_vm3, %v1600_v61, -inf  ;;  %v1850_v62 = vld [vmem:[%s3217_s26 + $0xc] sm:$0xf]  ;;  %s3636_s26 = scalar_lea.vmem %s3582_s4, %s3201_s30 }
 0x216   : > { %v1603_v3 = vpop.f32.mrb[30].mxu1  ;;  %v2754_v4 = vpop.f32.mrb[31].mxu0 }
 0x217   : > { %v2760_v5 = vpop.f32.mrb[31].mxu1  ;;  %v1993_v4 = vsel %vm1661_vm4, %v1850_v62, 0 }
 0x219   : > { %1616 = vmax.xlane.f32.xlu1 %v1615_v7 }
 0x29a   : > { %v1608_v8 = vpop.xlane.xlu0 %1607 }
 0x29b   : > { %v1618_v9 = vsub.f32 %v1462_v50, %v1608_v8  ;;  %v1855_v50 = vsel %vm1661_vm4, %v1847_v43, 0 }
 0x29d   : > { %v1622_v10 = vmul.f32 1.442695, %v1618_v9 }
 0x29e   : > { %v1611_v11 = vpop.xlane.xlu0 %1610 }
 0x29f   : > { %2934 = vpow2.f32 %v1622_v10  ;;  %v1619_v12 = vsub.f32 %v1508_v51, %v1611_v11 }
 0x2a1   : > { %v1624_v13 = vmul.f32 1.442695, %v1619_v12 }
 0x2a2   : > { %v1614_v14 = vpop.xlane.xlu1 %1613 }
 0x2a3   : > { %2936 = vpow2.f32 %v1624_v13  ;;  %v1620_v15 = vsub.f32 %v1554_v60, %v1614_v14  ;;  %v1947_v60 = vsel %vm1661_vm4, %v1849_v56, 0 }
 0x2a5   : > { %v1626_v16 = vmul.f32 1.442695, %v1620_v15 }
 0x2a6   : > { %v1617_v17 = vpop.xlane.xlu1 %1616 }
 0x2a7   : > { %2938 = vpow2.f32 %v1626_v16  ;;  %v1621_v18 = vsub.f32 %v1600_v61, %v1617_v17 }
 0x2a9   : > { %v2935_v19 = vpop.eup %2934  ;;  %v1628_v20 = vmul.f32 1.442695, %v1621_v18 }
 0x2aa   : > { %v1630_v21 = vsel %vm1421_vm3, %v2935_v19, 0.0 }
 0x2ab   : > { %2940 = vpow2.f32 %v1628_v20  ;;  %1631 = vadd.xlane.f32.xlu0 %v1630_v21 }
 0x2ad   : > { %v2937_v22 = vpop.eup %2936 }
 0x2ae   : > { %v1633_v23 = vsel %vm1421_vm3, %v2937_v22, 0.0 }
 0x2af   : > { %1634 = vadd.xlane.f32.xlu1 %v1633_v23 }
 0x2b1   : > { %v2939_v24 = vpop.eup %2938 }
 0x2b2   : > { %v1636_v25 = vsel %vm1421_vm3, %v2939_v24, 0.0 }
 0x2b3   : > { %1637 = vadd.xlane.f32.xlu0 %v1636_v25 }
 0x2b5   : > { %v2941_v26 = vpop.eup %2940 }
 0x2b6   : > { %v1639_v27 = vsel %vm1421_vm3, %v2941_v26, 0.0 }
 0x2b7   : > { %1640 = vadd.xlane.f32.xlu1 %v1639_v27 }
 0x338   : > { %v1632_v28 = vpop.xlane.xlu0 %1631 }
 0x339   : > { %2942 = vrcp.f32 %v1632_v28 }
 0x33c   : > { %v1635_v29 = vpop.xlane.xlu1 %1634 }
 0x33d   : > { %2944 = vrcp.f32 %v1635_v29 }
 0x340   : > { %v1638_v32 = vpop.xlane.xlu0 %1637 }
 0x341   : > { %2946 = vrcp.f32 %v1638_v32 }
 0x343   : > { %v2943_v34 = vpop.eup %2942 }
 0x344   : > { %v1646_v37 = vmul.f32 %v2943_v34, %v2935_v19  ;;  %v1641_v38 = vpop.xlane.xlu1 %1640 }
 0x345   : > { %2948 = vrcp.f32 %v1641_v38 }
 0x346   : > { %v1650_v39 = vpack.c.bf16 %v1646_v37, %v1646_v37  ;;  %v2550_v37 = vld [vmem:[%s3636_s26] ss:$0 sm:$0xff] }
 0x347   : > { %v2945_v40 = vpop.eup %2944 }
 0x348   : > { %v1647_v45 = vmul.f32 %v2945_v40, %v2937_v22  ;;  %2764 = vmatmul.mubr.msk.bf16.vlgmr.msra.gmra.mrb[32].mxu0 %vm1421_vm3, %v1650_v39 }
 0x349   : > { %2774 = vmatpush3.bf16.msra.mxu0 %v1755_v41  ;;  %2775 = vmatprep.mubr.msk.bf16.mxu0 %vm3051_vm1, %v3050_v2 }
 0x34a   : > { %v1651_v42 = vpack.c.bf16 %v1647_v45, %v1647_v45  ;;  %2785 = vmatprep.subr.bf16.mxu0 %v3050_v2 }
 0x34b   : > { %v2947_v46 = vpop.eup %2946 }
 0x34c   : > { %v1648_v48 = vmul.f32 %v2947_v46, %v2939_v24  ;;  %2770 = vmatmul.mubr.msk.bf16.vlgmr.msra.gmra.mrb[32].mxu1 %vm1421_vm3, %v1651_v42 }
 0x34d   : > { %2780 = vmatpush3.bf16.msra.mxu1 %v1801_v47  ;;  %2781 = vmatprep.mubr.msk.bf16.mxu1 %vm3051_vm1, %v3050_v2 }
 0x34e   : > { %v1652_v49 = vpack.c.bf16 %v1648_v48, %v1648_v48  ;;  %2791 = vmatprep.subr.bf16.mxu1 %v3050_v2 }
 0x34f   : > { %v2949_v51 = vpop.eup %2948 }
 0x350   : > { %v1649_v52 = vmul.f32 %v2949_v51, %v2941_v26  ;;  %2776 = vmatmul.mubr.msk.bf16.vlgmr.msra.gmra.mrb[36].mxu0 %vm1421_vm3, %v1652_v49  ;;  %v2929_v51 = vld [vmem:[%s3239_s3 + $0x8] sm:$0xff]  }
 0x351   : > { %2786 = vmatpush3.bf16.msra.mxu0 %v1855_v50  ;;  %2787 = vmatprep.mubr.msk.bf16.mxu0 %vm3051_vm1, %v3050_v2  ;;  %v2928_v50 = vld [vmem:[%s3239_s3] sm:$0xff]  }
 0x352   : > { %v1653_v53 = vpack.c.bf16 %v1649_v52, %v1649_v52  ;;  %2797 = vmatprep.subr.bf16.mxu0 %v3050_v2  ;;  %v2931_v52 = vld [vmem:[%s3253_s25 + $0x8] sm:$0xff]  }
 0x354   : > { %2782 = vmatmul.mubr.msk.bf16.vlgmr.msra.gmra.mrb[36].mxu1 %vm1421_vm3, %v1653_v53  ;;  %v2932_v53 = vld [vmem:[%s3253_s25 + $0x10] sm:$0xff]  }
 0x355   : > { %2793 = vmatprep.mubr.msk.bf16.mxu1 %vm3051_vm1, %v3050_v2  ;;  %2792 = vmatpush3.bf16.msra.mxu1 %v1901_v55 }
 0x356   : > { %2803 = vmatprep.subr.bf16.mxu1 %v3050_v2 }
 0x41b   : > { %v1699_v57 = vpop.f32.mrb[32].mxu0 }
 0x41c   : > { %v1843_v58 = vpack.c.bf16 %v1699_v57, %v1699_v57  ;;  %v2765_v59 = vpop.f32.mrb[33].mxu0 }
 0x41d   : > { %v1702_v61 = vpop.f32.mrb[34].mxu0 }
 0x41e   : > { %v2766_v63 = vpop.f32.mrb[35].mxu0  ;;  %2788 = vmatmul.mubr.msk.bf16.vlgmr.msra.gmra.mrb[40].mxu0 %vm1421_vm3, %v1843_v58  ;;  %v2551_v58 = vld [vmem:[%s3637_s16] ss:$0 sm:$0xff] }
 0x41f   : > { %v1745_v0 = vpop.f32.mrb[32].mxu1  ;;  %2798 = vmatpush3.bf16.msra.mxu0 %v1947_v60  ;;  %2799 = vmatprep.mubr.msk.bf16.mxu0 %vm3051_vm1, %v3050_v2  ;;  %v2552_v60 = vld [vmem:[%s3638_s23] ss:$0 sm:$0xff]  ;;  %v2933_v63 = vld [vmem:[%s3253_s25 + $0x18] sm:$0xff]  }
 0x420   : > { %v1844_v1 = vpack.c.bf16 %v1745_v0, %v1745_v0  ;;  %v2771_v3 = vpop.f32.mrb[33].mxu1  ;;  %2809 = vmatprep.subr.bf16.mxu0 %v3050_v2  ;;  %v2553_v0 = vld [vmem:[%s628_s18] ss:$0 sm:$0xff] }
 0x421   : > { %v1748_v5 = vpop.f32.mrb[34].mxu1 }
 0x422   : > { %v2772_v7 = vpop.f32.mrb[35].mxu1  ;;  %2794 = vmatmul.mubr.msk.bf16.vlgmr.msra.gmra.mrb[40].mxu1 %vm1421_vm3, %v1844_v1 }
 0x423   : > { %v1791_v8 = vpop.f32.mrb[36].mxu0  ;;  %2804 = vmatpush3.bf16.msra.mxu1 %v1993_v4  ;;  %2805 = vmatprep.mubr.msk.bf16.mxu1 %vm3051_vm1, %v3050_v2 }
 0x424   : > { %v1845_v9 = vpack.c.bf16 %v1791_v8, %v1791_v8  ;;  %v2777_v10 = vpop.f32.mrb[37].mxu0  ;;  %2817 = vmatprep.subr.bf16.mxu1 %v3050_v2 }
 0x425   : > { %v1794_v11 = vpop.f32.mrb[38].mxu0 }
 0x426   : > { %v2778_v12 = vpop.f32.mrb[39].mxu0  ;;  %2800 = vmatmul.mubr.msk.bf16.vlgmr.msra.gmra.mrb[44].mxu0 %vm1421_vm3, %v1845_v9  ;;  %v2557_v9 = vld [vmem:[%s636_s0] ss:$0 sm:$0xff] }
 0x427   : > { %v1837_v13 = vpop.f32.mrb[36].mxu1  ;;  %2813 = vmatprep.mubr.msk.bf16.mxu0 %vm3051_vm1, %v3050_v2  ;;  %2810 = vmatpush3.bf16.msra.mxu0 %v2928_v50 }
 0x428   : > { %v1846_v14 = vpack.c.bf16 %v1837_v13, %v1837_v13  ;;  %v2783_v15 = vpop.f32.mrb[37].mxu1  ;;  %2811 = vmatprep.subr.bf16.mxu0 %v3050_v2 }
 0x429   : > { %v1840_v16 = vpop.f32.mrb[38].mxu1 }
 0x42a   : > { %v2784_v17 = vpop.f32.mrb[39].mxu1  ;;  %2806 = vmatmul.mubr.msk.bf16.vlgmr.msra.gmra.mrb[44].mxu1 %vm1421_vm3, %v1846_v14 }
 0x42b   : > { %2825 = vmatprep.mubr.msk.bf16.mxu1 %vm3051_vm1, %v3050_v2  ;;  %2812 = vmatpush3.bf16.msra.mxu0 %v2929_v51 }
 0x4f1   : > { %v1891_v18 = vpop.f32.mrb[40].mxu0 }
 0x4f2   : > { %v2789_v19 = vpop.f32.mrb[41].mxu0  ;;  %v2035_v23 = vsel %vm797_vm2, %v1891_v18, 0.0 }
 0x4f3   : > { %v1894_v20 = vpop.f32.mrb[42].mxu0 }
 0x4f4   : > { %v2790_v21 = vpop.f32.mrb[43].mxu0 }
 0x4f5   : > { %v1937_v22 = vpop.f32.mrb[40].mxu1 }
 0x4f6   : > { %v2036_v24 = vsel %vm797_vm2, %v1937_v22, 0.0  ;;  %v2795_v25 = vpop.f32.mrb[41].mxu1 }
 0x4f7   : > { %v2037_v26 = vadd.f32 %v2036_v24, %v2035_v23  ;;  %v1940_v27 = vpop.f32.mrb[42].mxu1 }
 0x4f8   : > { %v2796_v28 = vpop.f32.mrb[43].mxu1 }
 0x4f9   : > { %v1983_v29 = vpop.f32.mrb[44].mxu0  ;;  %v2564_v28 = vld [vmem:[%s642_s7] ss:$0 sm:$0xff] }
 0x4fa   : > { %v2038_v30 = vsel %vm797_vm2, %v1983_v29, 0.0  ;;  %v2801_v31 = vpop.f32.mrb[45].mxu0 }
 0x4fb   : > { %v2039_v32 = vadd.f32 %v2038_v30, %v2037_v26  ;;  %v1986_v33 = vpop.f32.mrb[46].mxu0  ;;  %v2563_v26 = vld [vmem:[%s639_s13] ss:$0 sm:$0xff] }
 0x4fc   : > { %v2802_v34 = vpop.f32.mrb[47].mxu0 }
 0x4fd   : > { %v2029_v35 = vpop.f32.mrb[44].mxu1 }
 0x4fe   : > { %v2040_v36 = vsel %vm797_vm2, %v2029_v35, 0.0  ;;  %v2807_v38 = vpop.f32.mrb[45].mxu1 }
 0x4ff   : > { %v2041_v39 = vadd.f32 %v2040_v36, %v2039_v32  ;;  %v2032_v40 = vpop.f32.mrb[46].mxu1 }
 0x500   : > { %v2808_v41 = vpop.f32.mrb[47].mxu1 }
 0x501   : > { %v2049_v44 = vadd.f32 %v2550_v37, %v2041_v39 }
 0x503   : > { %v2050_v45 = vadd.f32 %v2049_v44, %v3277_v6  ;;  %v2930_v6 = vld [vmem:[%s3253_s25] sm:$0xff]  }
 0x504   : > { %2818 = vmatpush3.bf16.msra.mxu1 %v2930_v6 }
 0x505   : > { %v2053_v42 = vsel %vm797_vm2, %v2050_v45, 0.0  ;;  %2819 = vmatprep.subr.bf16.mxu1 %v3050_v2 }
 0x506   : > { %2054 = vadd.xlane.f32.xlu0 %v2053_v42 }
 0x508   : > { %2820 = vmatpush3.bf16.msra.mxu1 %v2931_v52 }
 0x509   : > { %2821 = vmatprep.subr.bf16.mxu1 %v3050_v2 }
 0x50c   : > { %2822 = vmatpush3.bf16.msra.mxu1 %v2932_v53 }
 0x50d   : > { %2823 = vmatprep.subr.bf16.mxu1 %v3050_v2 }
 0x510   : > { %2824 = vmatpush3.bf16.msra.mxu1 %v2933_v63 }
 0x593   : > { %v2055_v46 = vpop.xlane.xlu0 %2054 }
 0x594   : > { %v2057_v43 = vmul.f32 0.03125, %v2055_v46 }
 0x596   : > { %v2058_v47 = vsub.f32 %v2050_v45, %v2057_v43 }
 0x598   : > { %v2059_v48 = vmul.f32 %v2058_v47, %v2058_v47 }
 0x59a   : > { %v2060_v49 = vsel %vm797_vm2, %v2059_v48, 0.0 }
 0x59b   : > { %2061 = vadd.xlane.f32.xlu1 %v2060_v49 }
 0x628   : > { %v2062_v54 = vpop.xlane.xlu1 %2061 }
 0x629   : > { %v2063_v55 = vmul.f32 0.03125, %v2062_v54 }
 0x62b   : > { %v2064_v56 = vadd.f32 1e-12, %v2063_v55 }
 0x62d   : > { %2950 = vrsqrt.f32 %v2064_v56 }
 0x637   : > { %v2951_v57 = vpop.eup %2950 }
 0x638   : > { %v2066_v59 = vmul.f32 %v2951_v57, %v2058_v47 }
 0x63a   : > { %v2073_v61 = vmul.f32 %v2551_v58, %v2066_v59 }
 0x63c   : > { %v2080_v62 = vadd.f32 %v2552_v60, %v2073_v61 }
 0x63e   : > { %v2081_v2 = vpack.c.bf16 %v2080_v62, %v2080_v62 }
 0x640   : > { %2814 = vmatmul.mubr.msk.bf16.vlgmr.msra.gmra.mrb[48].mxu0 %vm797_vm2, %v2081_v2 }
 0x713   : > { %v2142_v1 = vpop.f32.mrb[48].mxu0 }
 0x714   : > { %v2143_v3 = vadd.f32 %v2553_v0, %v2142_v1  ;;  %v2815_v4 = vpop.f32.mrb[49].mxu0 }
 0x715   : > { %v2145_v5 = vpop.f32.mrb[50].mxu0 }
 0x716   : > { %v2148_v7 = vpack.c.bf16 %v2143_v3, %v2143_v3  ;;  %v2816_v8 = vpop.f32.mrb[51].mxu0 }
 0x718   : > { %2826 = vmatmul.mubr.msk.bf16.vlgmr.msra.gmra.mrb[48].mxu1 %vm2188_vm5, %v2148_v7 }
 0x7eb   : > { %v2226_v10 = vpop.f32.mrb[48].mxu1 }
 0x7ec   : > { %v2227_v11 = vadd.f32 %v2557_v9, %v2226_v10  ;;  %v2827_v12 = vpop.f32.mrb[49].mxu1 }
 0x7ed   : > { %v2229_v13 = vpop.f32.mrb[50].mxu1 }
 0x7ee   : > { %v2828_v14 = vpop.f32.mrb[51].mxu1  ;;  %v2232_v15 = vadd.f32 %v2227_v11, %v2080_v62 }
 0x7f0   : > { %v2235_v16 = vsel %vm797_vm2, %v2232_v15, 0.0 }
 0x7f1   : > { %2236 = vadd.xlane.f32.xlu0 %v2235_v16 }
 0x87e   : > { %v2237_v17 = vpop.xlane.xlu0 %2236 }
 0x87f   : > { %v2238_v18 = vmul.f32 0.03125, %v2237_v17 }
 0x881   : > { %v2239_v19 = vsub.f32 %v2232_v15, %v2238_v18 }
 0x883   : > { %v2240_v20 = vmul.f32 %v2239_v19, %v2239_v19 }
 0x885   : > { %v2241_v21 = vsel %vm797_vm2, %v2240_v20, 0.0 }
 0x886   : > { %2242 = vadd.xlane.f32.xlu1 %v2241_v21 }
 0x913   : > { %v2243_v22 = vpop.xlane.xlu1 %2242 }
 0x914   : > { %v2244_v23 = vmul.f32 0.03125, %v2243_v22 }
 0x916   : > { %v2245_v24 = vadd.f32 1e-12, %v2244_v23 }
 0x918   : > { %2952 = vrsqrt.f32 %v2245_v24 }
 0x922   : > { %v2953_v25 = vpop.eup %2952 }
 0x923   : > { %v2247_v27 = vmul.f32 %v2953_v25, %v2239_v19  ;;  %2266 = sbr.rel (%p2565_p1) target bundleno = 2346 (0x92a), region = 80 }
 0x925   : > { %v2254_v29 = vmul.f32 %v2563_v26, %v2247_v27 }
 0x927   : > { %v2261_v30 = vadd.f32 %v2564_v28, %v2254_v29 }
 0x929   : > { %2262 = vst.msk [vmem:[#allocation2] sm:$0xff] %vm797_vm2, %v2261_v30  ;;  %2267 = vst.msk [vmem:[%s593_s29] sm:$0xff] (!%p2565_p1), %vm797_vm2, %v2261_v30 }
 0x92a PF: > { %s3641_s1 = sld [smem:[#allocation10_spill]]  ;;  %s3642_s13 = sld [smem:[#allocation7_spill]] }
 0x92b   : > { %s3644_s7 = sld [smem:[#allocation25_spill]]  ;;  %s2282_s16 = sshll.u32 %s593_s29, 4  ;;  %s2283_s16 = int_to_ptr.vmem [resolvable:$true] %s2282_s16 }
 0x92c   : > { %s2954_s23 = scalar_lea.vmem %s2283_s16, 128  ;;  %s3052_s12 = smov [#allocation3]  }
 0x92d   : > { %p2955_p2 = scmp.ne.s32.totalorder %s2283_s16, %s2954_s23  ;;  %s2958_s28 = sshll.u32 %s3052_s12, 4  ;;  %s2959_s28 = int_to_ptr.vmem [resolvable:$false] %s2958_s28 }
 0x92e   : > { %s2960_s14 = scalar_lea.vmem %s2959_s28, 256  ;;  %p2961_p6 = scmp.lt.s32.totalorder %s2283_s16, %s2959_s28 }
 0x92f   : > { %p2956_p4 = pnand %p2955_p2, %p3172_p3  ;;  %p2962_p7 = scmp.lt.s32.totalorder %s2960_s14, %s2954_s23 }
 0x930   : > { %s2567_s26 = sshll.u32 %s3641_s1, 7  ;;  %s3645_s19 = sand.u32 1, %s3642_s13  }
 0x931   : > { %s3527_s15 = scalar_lea.hbm %s3644_s7, %s2567_s26  ;;  %s2269_s22 = scalar_lea.sflag [#allocation4], %s3645_s19 }
 0x932   : > { %p2957_p5 = pneg %p2956_p4  ;;  %p2963_p8 = por %p2962_p7, %p2961_p6 }
 0x934   : > { %p2964_p10 = pnand %p2963_p8, %p2957_p5 }
 0x936   : > { %2967 = shalt.err (!%p2964_p10)
}
 0x937   : > { %s2968_s17 = scalar_lea.hbm %s3527_s15, 128  ;;  %s2972_s0 = scalar_lea.hbm %s3644_s7, 256 }
 0x938   : > { %p2969_p11 = scmp.ne.s32.totalorder %s3527_s15, %s2968_s17  ;;  %p2973_p0 = scmp.lt.u32.totalorder %s3527_s15, %s3644_s7 }
 0x939   : > { %p2974_p1 = scmp.lt.u32.totalorder %s2972_s0, %s2968_s17  ;;  %p2976_p4 = scmp.lt.u32.totalorder %s2968_s17, %s3527_s15 }
 0x93a   : > { %p2970_p12 = pnand %p2969_p11, %p3172_p3 }
 0x93b   : > { %p2975_p2 = por %p2974_p1, %p2973_p0 }
 0x93c   : > { %p2971_p13 = pneg %p2970_p12 }
 0x93d   : > { %p2977_p5 = por %p2976_p4, %p2975_p2 }
 0x93f   : > { %p2978_p6 = pnand %p2977_p5, %p2971_p13 }
 0x941   : > { %2981 = shalt.err (!%p2978_p6)
}
 0x942   : > { %2831 = dma.vmem_to_hbm [thread:$0]  (%p3172_p3), %s2283_s16, 128, %s3527_s15, %s2269_s22  }
 0x943 PF: > { %s3646_s27 = sld [smem:[#allocation13_spill]]  ;;  %s3647_s20 = sld [smem:[#allocation6_spill]] }
 0x949   : > { %p2837_p7 = scmp.ge.s32.totalorder %s3646_s27, 2  ;;  %s2294_s1 = sand.u32 1, %s3647_s20  }
 0x94a   : > { %s2295_s13 = scalar_lea.sflag [#allocation4], %s2294_s1 }
 0x94b   : > { %p2834_p8 = pnand %p2837_p7, %p3182_p9 }
 0x94d   : > { %3015 = dma.done.wait (!%p2834_p8), %s2295_s13, 128  }
 0x94e   : > { %3017 = vsyncadd (!%p2834_p8), %s2295_s13, 4294967168  ;;  %s26_s15 = sadd.s32 1, %s3646_s27   ;;  %s3649_s25 = sld [smem:[#allocation7_spill]] }
 0x94f   : > { %p23_p10 = scmp.ge.s32.totalorder %s26_s15, 6   ;;  %s3650_s26 = sld [smem:[#allocation8_spill]] }
 0x950   : > { %s3651_s27 = sld [smem:[#allocation18_spill]]  ;;  %s3652_s28 = sld [smem:[#allocation11_spill]] }
 0x951   : > { %s3653_s29 = sld [smem:[#allocation12_spill]]  ;;  %s3654_s30 = sld [smem:[#allocation14_spill]] }
 0x952   : > { %s3655_s14 = sld [smem:[#allocation16_spill]]  ;;  %25 = sbr.rel (!%p23_p10) target bundleno = 13 (0xd), region = 151 }
 0x959   :  { %2300 = vsyncpa [#allocation4], 1 }
 0x95a   :  { %2302 = vsyncpa [#allocation4 + $0x1], 1 }

</bundles_post_ra>
